<compile_context>
chip_gen: v5e
topology: v5e:2x2
jax: 0.10.0
libtpu: 0.0.40
codegen_flags: <defaults>
</compile_context>

<pallas_src>
import jax
import jax.numpy as jnp
from jax.experimental import pallas as pl
from jax.experimental.pallas import tpu as pltpu


def _sdpa_kernel(q_ref, k_ref, v_ref, mask_ref, out_ref, attn_ref):
    # Each grid step processes a (Bt, ...) slab of batch elements.
    q = q_ref[...]            # (Bt, Lq, D)   — keep native dtype for the MXU
    k = k_ref[...]            # (Bt, Lk, D)
    v = v_ref[...]            # (Bt, Lk, Dv)
    m = mask_ref[...].astype(jnp.float32)  # (Bt, Lq, Lk)

    # scores = q @ k^T, contracted over the last dim of both operands:
    # no transpose / relayout, f32 accumulation out of the MXU.
    scores = jax.lax.dot_general(
        q, k,
        dimension_numbers=(((2,), (2,)), ((0,), (0,))),
        preferred_element_type=jnp.float32,
    )
    # NOTE: no sqrt(d_k) scaling — faithful to the TFT reference quirk.

    # Additive mask, exactly like the reference: attn += -1e9 * (1 - mask).
    scores = scores + jnp.float32(-1000000000.0) * (1.0 - m)

    # Numerically-stable softmax over the last dim (f32 math on the VPU/EUP).
    scores = scores - jnp.max(scores, axis=-1, keepdims=True)
    e = jnp.exp(scores)
    attn = e * pl.reciprocal(jnp.sum(e, axis=-1, keepdims=True), approx=True)

    # dropout(p=0.0) == identity.

    # output = attn @ v; feed the MXU operands in v's dtype, accumulate in f32.
    out = jax.lax.dot_general(
        attn.astype(v.dtype), v,
        dimension_numbers=(((2,), (1,)), ((0,), (0,))),
        preferred_element_type=jnp.float32,
    )

    attn_ref[...] = attn.astype(attn_ref.dtype)
    out_ref[...] = out.astype(out_ref.dtype)


def _choose_batch_tile(B, per_batch_bytes, vmem_budget_bytes=8 * 1024 * 1024):
    """Largest divisor Bt of B that fits the VMEM budget, preferring grid >= 2
    so both v7x TensorCores get work (no-op on single-TC v5e/v6e)."""
    best = 1
    for bt in range(1, B + 1):
        if B % bt:
            continue
        if bt * per_batch_bytes > vmem_budget_bytes:
            continue
        if (B // bt) >= 2 or B == 1:
            best = bt
    return best


def scaled_dot_product_attention(q, k, v, mask):
    """Returns (output, attn) exactly like the PyTorch module's forward."""
    B, Lq, D = q.shape
    _, Lk, _ = k.shape
    _, _, Dv = v.shape
    assert k.shape == (B, Lk, D)
    assert v.shape[:2] == (B, Lk)
    assert mask.shape == (B, Lq, Lk)

    out_dtype = q.dtype
    attn_dtype = q.dtype  # matches torch result dtype (f32 in, f32 out; bf16 in, bf16 out)

    # Rough per-batch-element VMEM footprint (inputs + outputs + f32 intermediates),
    # used only to pick a batch tile that stays comfortably inside the scoped VMEM
    # default with double-buffering.
    itemsize = jnp.dtype(q.dtype).itemsize
    per_batch_bytes = (
        (Lq * D + Lk * D + Lk * Dv) * itemsize            # q, k, v tiles
        + Lq * Lk * jnp.dtype(mask.dtype).itemsize        # mask tile
        + Lq * Dv * jnp.dtype(out_dtype).itemsize         # out tile
        + Lq * Lk * jnp.dtype(attn_dtype).itemsize        # attn tile
        + 3 * Lq * Lk * 4                                 # f32 scores/exp temps
    )
    Bt = _choose_batch_tile(B, per_batch_bytes)
    grid = (B // Bt,)

    out_shapes = (
        jax.ShapeDtypeStruct((B, Lq, Dv), out_dtype),   # output
        jax.ShapeDtypeStruct((B, Lq, Lk), attn_dtype),  # attention weights
    )

    grid_spec = pltpu.PrefetchScalarGridSpec(
        num_scalar_prefetch=0,
        grid=grid,
        in_specs=[
            pl.BlockSpec((Bt, Lq, D), lambda b: (b, 0, 0)),
            pl.BlockSpec((Bt, Lk, D), lambda b: (b, 0, 0)),
            pl.BlockSpec((Bt, Lk, Dv), lambda b: (b, 0, 0)),
            pl.BlockSpec((Bt, Lq, Lk), lambda b: (b, 0, 0)),
        ],
        out_specs=[
            pl.BlockSpec((Bt, Lq, Dv), lambda b: (b, 0, 0)),
            pl.BlockSpec((Bt, Lq, Lk), lambda b: (b, 0, 0)),
        ],
    )

    return pl.pallas_call(
        _sdpa_kernel,
        out_shape=out_shapes,
        grid_spec=grid_spec,
        compiler_params=pltpu.CompilerParams(
            dimension_semantics=("parallel",),
        ),
    )(q, k, v, mask)


if __name__ == "__main__":
    key = jax.random.PRNGKey(0)
    kq, kk, kv = jax.random.split(key, 3)

    B, Lq, Lk, D, Dv = 2, 8, 8, 32, 32
    q = jax.random.normal(kq, (B, Lq, D), dtype=jnp.float32)
    k = jax.random.normal(kk, (B, Lk, D), dtype=jnp.float32)
    v = jax.random.normal(kv, (B, Lk, Dv), dtype=jnp.float32)
    # Causal mask (1 = keep, 0 = masked), as typically passed in TFT.
    mask = jnp.tril(jnp.ones((Lq, Lk), dtype=jnp.float32))[None].repeat(B, axis=0)

    out, attn = scaled_dot_product_attention(q, k, v, mask)
    jax.block_until_ready((out, attn))

    # Pure-JAX reference check (same math as the PyTorch module).
    scores_ref = jnp.einsum("bqd,bkd->bqk", q, k) + (-1e9) * (1.0 - mask)
    attn_ref = jax.nn.softmax(scores_ref, axis=-1)
    out_ref = jnp.einsum("bqk,bkv->bqv", attn_ref, v)
    # Tolerance loosened slightly for the EUP approximate reciprocal.
    assert jnp.allclose(attn, attn_ref, atol=2e-3, rtol=2e-3), "attn mismatch"
    assert jnp.allclose(out, out_ref, atol=2e-3, rtol=2e-3), "output mismatch"

    print("KERNEL_OK")
</pallas_src>

<mosaic_0001>
module attributes {stable_mosaic.version = 11 : i64} {
  func.func @_sdpa_kernel(%arg0: i32, %arg1: memref<1x8x32xf32, #tpu.memory_space<vmem>>, %arg2: memref<1x8x32xf32, #tpu.memory_space<vmem>>, %arg3: memref<1x8x32xf32, #tpu.memory_space<vmem>>, %arg4: memref<1x8x8xf32, #tpu.memory_space<vmem>>, %arg5: memref<1x8x32xf32, #tpu.memory_space<vmem>>, %arg6: memref<1x8x8xf32, #tpu.memory_space<vmem>>) attributes {dimension_semantics = [#tpu.dimension_semantics<parallel>], iteration_bounds = array<i64: 2>, scalar_prefetch = 0 : i64, scratch_operands = 0 : i64, tpu.core_type = #tpu.core_type<tc>, window_params = [{transform_indices = @transform_0, window_bounds = array<i64: 1, 8, 32>}, {transform_indices = @transform_1, window_bounds = array<i64: 1, 8, 32>}, {transform_indices = @transform_2, window_bounds = array<i64: 1, 8, 32>}, {transform_indices = @transform_3, window_bounds = array<i64: 1, 8, 8>}, {transform_indices = @transform_4, window_bounds = array<i64: 1, 8, 32>}, {transform_indices = @transform_5, window_bounds = array<i64: 1, 8, 8>}]} {
    %c0 = arith.constant 0 : index
    %c0_0 = arith.constant 0 : index
    %c0_1 = arith.constant 0 : index
    %0 = vector.load %arg1[%c0, %c0_0, %c0_1] : memref<1x8x32xf32, #tpu.memory_space<vmem>>, vector<1x8x32xf32>
    %c0_2 = arith.constant 0 : index
    %c0_3 = arith.constant 0 : index
    %c0_4 = arith.constant 0 : index
    %1 = vector.load %arg2[%c0_2, %c0_3, %c0_4] : memref<1x8x32xf32, #tpu.memory_space<vmem>>, vector<1x8x32xf32>
    %c0_5 = arith.constant 0 : index
    %c0_6 = arith.constant 0 : index
    %c0_7 = arith.constant 0 : index
    %2 = vector.load %arg3[%c0_5, %c0_6, %c0_7] : memref<1x8x32xf32, #tpu.memory_space<vmem>>, vector<1x8x32xf32>
    %c0_8 = arith.constant 0 : index
    %c0_9 = arith.constant 0 : index
    %c0_10 = arith.constant 0 : index
    %3 = vector.load %arg4[%c0_8, %c0_9, %c0_10] : memref<1x8x8xf32, #tpu.memory_space<vmem>>, vector<1x8x8xf32>
    %cst = arith.constant dense<0.000000e+00> : vector<1x8x8xf32>
    %4 = tpu.matmul %0, %1, %cst {dimension_numbers = #tpu.dot_dimension_numbers<[2], [2], [1], [1], [0, 0, 0, 1, 1, 1], [0], [0]>} : vector<1x8x32xf32>, vector<1x8x32xf32>, vector<1x8x8xf32> -> vector<1x8x8xf32>
    %cst_11 = arith.constant 1.000000e+00 : f32
    %5 = vector.broadcast %cst_11 : f32 to vector<1x8x8xf32>
    %6 = arith.subf %5, %3 : vector<1x8x8xf32>
    %cst_12 = arith.constant -1.000000e+09 : f32
    %7 = vector.broadcast %cst_12 : f32 to vector<1x8x8xf32>
    %8 = arith.mulf %7, %6 : vector<1x8x8xf32>
    %9 = arith.addf %4, %8 : vector<1x8x8xf32>
    %cst_13 = arith.constant dense<0xFF800000> : vector<1x8xf32>
    %10 = vector.multi_reduction <maximumf>, %9, %cst_13 [2] : vector<1x8x8xf32> to vector<1x8xf32>
    %11 = vector.shape_cast %10 : vector<1x8xf32> to vector<1x8x1xf32>
    %12 = vector.broadcast %11 : vector<1x8x1xf32> to vector<1x8x8xf32>
    %13 = arith.subf %9, %12 : vector<1x8x8xf32>
    %14 = math.exp %13 : vector<1x8x8xf32>
    %cst_14 = arith.constant dense<0.000000e+00> : vector<1x8xf32>
    %15 = vector.multi_reduction <add>, %14, %cst_14 [2] : vector<1x8x8xf32> to vector<1x8xf32>
    %16 = vector.shape_cast %15 : vector<1x8xf32> to vector<1x8x1xf32>
    %17 = tpu.reciprocal %16 {approx = true} : vector<1x8x1xf32> -> vector<1x8x1xf32>
    %18 = vector.broadcast %17 : vector<1x8x1xf32> to vector<1x8x8xf32>
    %19 = arith.mulf %14, %18 : vector<1x8x8xf32>
    %cst_15 = arith.constant dense<0.000000e+00> : vector<1x8x32xf32>
    %20 = tpu.matmul %19, %2, %cst_15 {dimension_numbers = #tpu.dot_dimension_numbers<[2], [1], [1], [2], [0, 0, 0, 1, 1, 2], [0], [0]>} : vector<1x8x8xf32>, vector<1x8x32xf32>, vector<1x8x32xf32> -> vector<1x8x32xf32>
    %c0_16 = arith.constant 0 : index
    %c0_17 = arith.constant 0 : index
    %c0_18 = arith.constant 0 : index
    %21 = vector.load %arg6[%c0_16, %c0_17, %c0_18] : memref<1x8x8xf32, #tpu.memory_space<vmem>>, vector<1x8x8xf32>
    tpu.vector_store %arg6[%c0_16, %c0_17, %c0_18], %19 {strides = array<i32>} : memref<1x8x8xf32, #tpu.memory_space<vmem>>, vector<1x8x8xf32>,
    %c0_19 = arith.constant 0 : index
    %c0_20 = arith.constant 0 : index
    %c0_21 = arith.constant 0 : index
    %22 = vector.load %arg5[%c0_19, %c0_20, %c0_21] : memref<1x8x32xf32, #tpu.memory_space<vmem>>, vector<1x8x32xf32>
    tpu.vector_store %arg5[%c0_19, %c0_20, %c0_21], %20 {strides = array<i32>} : memref<1x8x32xf32, #tpu.memory_space<vmem>>, vector<1x8x32xf32>,
    return
  }
  func.func @transform_0(%arg0: i32) -> (i32, i32, i32) {
    %c0_i32 = arith.constant 0 : i32
    %c0_i32_0 = arith.constant 0 : i32
    %c0_i32_1 = arith.constant 0 : i32
    return %arg0, %c0_i32, %c0_i32_0 : i32, i32, i32
  }
  func.func @transform_1(%arg0: i32) -> (i32, i32, i32) {
    %c0_i32 = arith.constant 0 : i32
    %c0_i32_0 = arith.constant 0 : i32
    %c0_i32_1 = arith.constant 0 : i32
    return %arg0, %c0_i32, %c0_i32_0 : i32, i32, i32
  }
  func.func @transform_2(%arg0: i32) -> (i32, i32, i32) {
    %c0_i32 = arith.constant 0 : i32
    %c0_i32_0 = arith.constant 0 : i32
    %c0_i32_1 = arith.constant 0 : i32
    return %arg0, %c0_i32, %c0_i32_0 : i32, i32, i32
  }
  func.func @transform_3(%arg0: i32) -> (i32, i32, i32) {
    %c0_i32 = arith.constant 0 : i32
    %c0_i32_0 = arith.constant 0 : i32
    %c0_i32_1 = arith.constant 0 : i32
    return %arg0, %c0_i32, %c0_i32_0 : i32, i32, i32
  }
  func.func @transform_4(%arg0: i32) -> (i32, i32, i32) {
    %c0_i32 = arith.constant 0 : i32
    %c0_i32_0 = arith.constant 0 : i32
    %c0_i32_1 = arith.constant 0 : i32
    return %arg0, %c0_i32, %c0_i32_0 : i32, i32, i32
  }
  func.func @transform_5(%arg0: i32) -> (i32, i32, i32) {
    %c0_i32 = arith.constant 0 : i32
    %c0_i32_0 = arith.constant 0 : i32
    %c0_i32_1 = arith.constant 0 : i32
    return %arg0, %c0_i32, %c0_i32_0 : i32, i32, i32
  }
}

</mosaic_0001>

<bundles_post_ra>
// kernel: tpu_custom_call.1
= control target key start
LH: loop header
LB: loop body
LE: loop exit
PB: predicated region body
PF: predicated region fallthrough
CT: control target
= control target key end

     0   :  { %s1227_s0 = inlined_call_operand.hbm [shape: f32[2,8,32], index: 0, kind: input, shape index: {}]   ;;  %s1228_s1 = inlined_call_operand.hbm [shape: f32[2,8,32], index: 1, kind: input, shape index: {}]   ;;  %s1229_s2 = inlined_call_operand.hbm [shape: f32[2,8,32], index: 2, kind: input, shape index: {}]   ;;  %s1230_s3 = inlined_call_operand.hbm [shape: f32[2,8,8], index: 3, kind: input, shape index: {}]   ;;  %s1231_s4 = inlined_call_operand.hbm [shape: f32[2,8,32], index: 4, kind: output, shape index: {0}]   ;;  %s1232_s5 = inlined_call_operand.hbm [shape: f32[2,8,8], index: 5, kind: output, shape index: {1}]  }
   0x1   :  { %1237 = sst [smem:[#allocation22_spill]] %s1228_s1 }
   0x2   :  { %11 = vsyncpa [#allocation3], 0 }
   0x3   :  { %13 = vsyncpa [#allocation3 + $0x1], 0 }
   0x4   :  { %14 = vsyncpa [#allocation6], 0 }
   0x5   :  { %16 = vsyncpa [#allocation6 + $0x1], 0 }
   0x6   :  { %17 = vsyncpa [#allocation9], 0 }
   0x7   :  { %19 = vsyncpa [#allocation9 + $0x1], 0 }
   0x8   :  { %20 = vsyncpa [#allocation4], 0 }
   0x9   :  { %22 = vsyncpa [#allocation4 + $0x1], 0 }
   0xa   :  { %23 = vsyncpa [#allocation12], 0 }
   0xb   :  { %25 = vsyncpa [#allocation12 + $0x1], 0  ;;  %s996_s18 = smov 0   ;;  %s998_s19 = smov 0  }
   0xc   :  { %s1000_s20 = smov 0   ;;  %s1002_s21 = smov 0  }
   0xd LB: > { %1238 = sst [smem:[#allocation18_spill]] %s960_s20  ;;  %s1017_s22 = sadd.s32 4294967295, %s964_s21   ;;  %s964_s21 = sphi %s1002_s21, %s1249_s21   ;;  %s960_s20 = sphi %s1000_s20, %s1251_s20   ;;  %s956_s19 = sphi %s998_s19, %s1253_s19   ;;  %s952_s18 = sphi %s996_s18, %s1252_s18  }
   0xe   : > { %1239 = sst [smem:[#allocation19_spill]] %s964_s21  ;;  %s641_s23 = sadd.s32 4294967294, %s964_s21  }
   0xf   : > { %s1021_s24 = sadd.s32 1, %s964_s21   ;;  %s38_s25 = sadd.s32 1, %s960_s20 }
  0x10   : > { %1240 = sst [smem:[#allocation20_spill]] %s1021_s24  ;;  %s35_s26 = ssub.s32 %s964_s21, %s1021_s24 }
  0x11   : > { %p45_p0 = scmp.ne.s32.totalorder %s960_s20, %s956_s19  ;;  %p36_p1 = scmp.eq.s32.totalorder %s35_s26, 0 }
  0x12   : > { %p46_p2 = scmp.eq.s32.totalorder %s964_s21, 0  ;;  %p51_p3 = scmp.ne.s32.totalorder %s956_s19, %s952_s18 }
  0x13   : > { %p52_p4 = scmp.eq.s32.totalorder %s1017_s22, 0  ;;  %p153_p7 = scmp.eq.s32.totalorder %s1017_s22, 1 }
  0x14   : > { %s1033_s27 = scalar_select %p36_p1, %s960_s20, %s38_s25  }
  0x15   : > { %p47_p5 = por %p46_p2, %p45_p0  ;;  %p1035_p6 = por %p52_p4, %p51_p3 }
  0x16   : > { %1241 = sst [smem:[#allocation21_spill]] %s1033_s27  ;;  %p159_p8 = scmp.eq.s32.totalorder %s641_s23, 1 }
  0x17   : > { %p643_p9 = scmp.ge.s32.totalorder %s964_s21, 2  ;;  %p700_p10 = scmp.lt.s32.totalorder %s964_s21, 2 }
  0x18   : > { %p1042_p11 = por %p153_p7, %p45_p0  ;;  %p1046_p12 = por %p159_p8, %p51_p3 }
  0x19   : > { %s1051_s6 = sand.u32 1, %s960_s20   ;;  %s1054_s7 = sshll.u32 %s964_s21, 3 }
  0x1a   : > { %s1057_s8 = sshll.u32 %s1051_s6, 3  ;;  %p1059_p13 = pnand %p700_p10, %p47_p5 }
  0x1b   : > { %s224_s10 = sand.u32 1, %s964_s21   ;;  %s1246_s1 = sld [smem:[#allocation22_spill]] }
  0x1c   : > { %s228_s14 = scalar_lea.vmem [#allocation5], %s1057_s8  ;;  %p652_p0 = scmp.ge.s32.totalorder %s964_s21, 1 }
  0x1d   : > { %s236_s15 = sshll.u32 %s228_s14, 4  ;;  %s1070_s17 = scalar_lea.sflag [#allocation6], %s224_s10  ;;  %s237_s15 = int_to_ptr.vmem [resolvable:$true] %s236_s15 }
  0x1e   : > { %p742_p2 = pneg %p1059_p13 }
  0x21   : > { %s232_s13 = scalar_lea.hbm %s1246_s1, %s1054_s7  ;;  %s745_s12 = scalar_lea.hbm %s1246_s1, 16 }
  0x22   : > { %s234_s16 = sshll.u32 %s232_s13, 4  ;;  %s235_s16 = int_to_ptr.hbm [resolvable:$true] %s234_s16 }
  0x23   : > { %s738_s23 = sshra.s32 %s235_s16, 4  ;;  %s739_s23 = int_to_ptr.hbm [resolvable:$true] %s738_s23 }
  0x24   : > { %s740_s25 = scalar_lea.hbm %s739_s23, 8  ;;  %p746_p5 = scmp.lt.s32.totalorder %s739_s23, %s1246_s1 }
  0x25   : > { %p741_p1 = scmp.ne.s32.totalorder %s739_s23, %s740_s25  ;;  %p747_p7 = scmp.lt.s32.totalorder %s745_s12, %s740_s25 }
  0x27   : > { %p743_p3 = pnand %p742_p2, %p741_p1  ;;  %p748_p8 = por %p747_p7, %p746_p5 }
  0x29   : > { %p744_p4 = pneg %p743_p3 }
  0x2b   : > { %p749_p10 = pnand %p748_p8, %p744_p4 }
  0x2d   : > { %752 = shalt.err (!%p749_p10)
}
  0x2e   : > { %686 = dma.hbm_to_vmem [thread:$0]  (!%p1059_p13), %s235_s16, 128, %s237_s15, %s1070_s17  }
  0x2f   : > { %p279_p1 = scmp.lt.s32.totalorder %s964_s21, 3  ;;  %s213_s11 = scalar_lea.hbm %s1227_s0, %s1054_s7 }
  0x30   : > { %s215_s25 = sshll.u32 %s213_s11, 4  ;;  %s209_s12 = scalar_lea.vmem [#allocation2], %s1057_s8  ;;  %s216_s25 = int_to_ptr.hbm [resolvable:$true] %s215_s25 }
  0x31   : > { %p1093_p3 = pnand %p652_p0, %p279_p1  ;;  %s217_s13 = sshll.u32 %s209_s12, 4  ;;  %s218_s13 = int_to_ptr.vmem [resolvable:$true] %s217_s13 }
  0x32   : > { %s206_s14 = scalar_lea.sflag [#allocation3], %s1051_s6  ;;  %s768_s1 = sshra.s32 %s216_s25, 4  ;;  %s769_s1 = int_to_ptr.hbm [resolvable:$true] %s768_s1 }
  0x33   : > { %s770_s27 = scalar_lea.hbm %s769_s1, 8  ;;  %s775_s10 = scalar_lea.hbm %s1227_s0, 16 }
  0x34   : > { %p771_p4 = scmp.ne.s32.totalorder %s769_s1, %s770_s27  ;;  %p776_p0 = scmp.lt.s32.totalorder %s769_s1, %s1227_s0 }
  0x35   : > { %p777_p8 = scmp.lt.s32.totalorder %s775_s10, %s770_s27 }
  0x36   : > { %p773_p5 = pnand %p771_p4, %p742_p2 }
  0x37   : > { %p778_p10 = por %p777_p8, %p776_p0 }
  0x38   : > { %p774_p7 = pneg %p773_p5 }
  0x3a   : > { %p779_p1 = pnand %p778_p10, %p774_p7 }
  0x3c   : > { %782 = shalt.err (!%p779_p1)
}
  0x3d   : > { %683 = dma.hbm_to_vmem [thread:$0]  (!%p1059_p13), %s216_s25, 128, %s218_s13, %s206_s14  }
  0x3e   : > { %s251_s24 = scalar_lea.hbm %s1229_s2, %s1054_s7  ;;  %s247_s15 = scalar_lea.vmem [#allocation7], %s1057_s8 }
  0x3f   : > { %s255_s16 = sshll.u32 %s247_s15, 4  ;;  %s253_s21 = sshll.u32 %s251_s24, 4  ;;  %s256_s16 = int_to_ptr.vmem [resolvable:$true] %s255_s16  ;;  %s254_s21 = int_to_ptr.hbm [resolvable:$true] %s253_s21 }
  0x40   : > { %s798_s1 = sshra.s32 %s254_s21, 4  ;;  %s805_s25 = scalar_lea.hbm %s1229_s2, 16  ;;  %s799_s1 = int_to_ptr.hbm [resolvable:$true] %s798_s1 }
  0x41   : > { %s800_s20 = scalar_lea.hbm %s799_s1, 8  ;;  %p806_p0 = scmp.lt.s32.totalorder %s799_s1, %s1229_s2 }
  0x42   : > { %p801_p4 = scmp.ne.s32.totalorder %s799_s1, %s800_s20  ;;  %p807_p8 = scmp.lt.s32.totalorder %s805_s25, %s800_s20 }
  0x44   : > { %p803_p5 = pnand %p801_p4, %p742_p2  ;;  %p808_p10 = por %p807_p8, %p806_p0 }
  0x46   : > { %p804_p7 = pneg %p803_p5 }
  0x48   : > { %p809_p1 = pnand %p808_p10, %p804_p7 }
  0x4a   : > { %812 = shalt.err (!%p809_p1)
}
  0x4b   : > { %689 = dma.hbm_to_vmem [thread:$0]  (!%p1059_p13), %s254_s21, 128, %s256_s16, %s1070_s17  }
  0x4c   : > { %s270_s11 = scalar_lea.hbm %s1230_s3, %s1054_s7  ;;  %s266_s15 = scalar_lea.vmem [#allocation8], %s1057_s8 }
  0x4d   : > { %s272_s12 = sshll.u32 %s270_s11, 4  ;;  %s274_s27 = sshll.u32 %s266_s15, 4  ;;  %s273_s12 = int_to_ptr.hbm [resolvable:$true] %s272_s12  ;;  %s275_s27 = int_to_ptr.vmem [resolvable:$true] %s274_s27 }
  0x4e   : > { %s263_s1 = scalar_lea.sflag [#allocation9], %s1051_s6  ;;  %s828_s20 = sshra.s32 %s273_s12, 4  ;;  %s829_s20 = int_to_ptr.hbm [resolvable:$true] %s828_s20 }
  0x4f   : > { %s830_s10 = scalar_lea.hbm %s829_s20, 8  ;;  %s835_s17 = scalar_lea.hbm %s1230_s3, 16 }
  0x50   : > { %p831_p4 = scmp.ne.s32.totalorder %s829_s20, %s830_s10  ;;  %p836_p0 = scmp.lt.s32.totalorder %s829_s20, %s1230_s3 }
  0x51   : > { %p837_p8 = scmp.lt.s32.totalorder %s835_s17, %s830_s10 }
  0x52   : > { %p833_p5 = pnand %p831_p4, %p742_p2 }
  0x53   : > { %p838_p10 = por %p837_p8, %p836_p0 }
  0x54   : > { %p834_p7 = pneg %p833_p5 }
  0x56   : > { %p839_p1 = pnand %p838_p10, %p834_p7 }
  0x58   : > { %842 = shalt.err (!%p839_p1)
}
  0x59   : > { %692 = dma.hbm_to_vmem [thread:$0]  (!%p1059_p13), %s273_s12, 128, %s275_s27, %s263_s1  }
  0x5a   : > { %283 = sbr.rel (%p1093_p3) target bundleno = 617 (0x269), region = 36  ;;  %s1147_s6 = sand.u32 (!%p1093_p3), 1, %s956_s19  }
  0x5b   : > { %s1150_s8 = sshll.u32 (!%p1093_p3), %s1147_s6, 3  ;;  %s286_s13 = scalar_lea.sflag (!%p1093_p3), [#allocation3], %s1147_s6 }
  0x5c   : > { %s289_s14 = scalar_lea.vmem (!%p1093_p3), [#allocation2], %s1150_s8 }
  0x5f   : > { %931 = dma.done.wait (%p1035_p6), %s286_s13, 128  }
  0x60   : > { %933 = vsyncadd (%p1035_p6), %s286_s13, 4294967168  ;;  %s295_s9 = sand.u32 1, %s1017_s22   ;;  %s299_s24 = scalar_lea.vmem [#allocation5], %s1150_s8 }
  0x61   : > { %s296_s23 = scalar_lea.sflag [#allocation6], %s295_s9 }
  0x62   : > { %935 = dma.done.wait (%p1035_p6), %s296_s23, 256  }
  0x63   : > { %937 = vsyncadd (%p1035_p6), %s296_s23, 4294967040  ;;  %s309_s26 = scalar_lea.vmem [#allocation7], %s1150_s8  ;;  %s316_s11 = scalar_lea.sflag [#allocation9], %s1147_s6 }
  0x64   : > { %s319_s12 = scalar_lea.vmem [#allocation8], %s1150_s8 }
  0x65   : > { %939 = dma.done.wait (%p1035_p6), %s316_s11, 128  }
  0x66   : > { %941 = vsyncadd (%p1035_p6), %s316_s11, 4294967168  ;;  %vm373_vm0 = vcmask 261120   ;;  %v368_v0 = vld [vmem:[%s299_s24] sm:$0xff]  ;;  %v367_v1 = vld [vmem:[%s289_s14] sm:$0xff]  ;;  %vm400_vm1 = vcmask 64512   ;;  %s664_s28 = sshll.u32 %s1017_s22, 3 }
  0x67   : > { %659 = vmatpush.xpose.msk.msra.mxu0 %vm373_vm0, %v368_v0  ;;  %v370_v2 = vld [vmem:[%s319_s12] sm:$0xff]  ;;  %v369_v13 = vld [vmem:[%s309_s26] sm:$0xff]  ;;  %s467_s1 = scalar_lea.hbm %s1232_s5, %s664_s28  ;;  %s366_s20 = scalar_lea.vmem [#allocation11], %s1150_s8 }
  0x68   : > { %v371_v3 = vsub.f32 1.0, %v370_v2  ;;  %430 = vmatpush.msra.mxu1 %v369_v13  ;;  %s469_s10 = sshll.u32 %s366_s20, 4  ;;  %s471_s25 = sshll.u32 %s467_s1, 4  ;;  %s470_s10 = int_to_ptr.vmem [resolvable:$true] %s469_s10  ;;  %s472_s25 = int_to_ptr.hbm [resolvable:$true] %s471_s25 }
  0x69   : > { %s443_s21 = scalar_lea.sflag [#allocation12], %s1147_s6  ;;  %s872_s17 = sshra.s32 %s472_s25, 4  ;;  %s873_s17 = int_to_ptr.hbm [resolvable:$true] %s872_s17 }
  0x6a   : > { %660 = vmatmul.msk.f32.vlgmr.msra.gmra.mxu0 %vm373_vm0, %v367_v1  ;;  %v372_v4 = vmul.f32 -1e+09, %v371_v3  ;;  %s874_s22 = scalar_lea.hbm %s873_s17, 8  ;;  %s878_s13 = scalar_lea.hbm %s1232_s5, 16 }
  0x6b   : > { %p875_p6 = scmp.ne.s32.totalorder %s873_s17, %s874_s22  ;;  %p879_p3 = scmp.lt.s32.totalorder %s873_s17, %s1232_s5 }
  0x6c   : > { %p880_p4 = scmp.lt.s32.totalorder %s878_s13, %s874_s22 }
  0x6d   : > { %p876_p13 = pnand %p875_p6, %p1042_p11 }
  0x6e   : > { %p881_p5 = por %p880_p4, %p879_p3 }
  0x6f   : > { %p877_p2 = pneg %p876_p13 }
  0x71   : > { %p882_p7 = pnand %p881_p5, %p877_p2 }
  0xe7   : > { %v397_v5 = vpop.f32.mrf.mxu0 }
  0xe8   : > { %v398_v6 = vadd.f32 %v397_v5, %v372_v4 }
  0xea   : > { %v401_v7 = vsel %vm400_vm1, %v398_v6, -inf }
  0xeb   : > { %402 = vmax.xlane.f32.xlu0 %v401_v7 }
 0x15e   : > { %v403_v8 = vpop.xlane.xlu0 %402 }
 0x15f   : > { %v404_v9 = vsub.f32 %v398_v6, %v403_v8 }
 0x161   : > { %v405_v10 = vmul.f32 1.442695, %v404_v9 }
 0x163   : > { %734 = vpow2.f32 %v405_v10 }
 0x169   : > { %v735_v11 = vpop.eup %734 }
 0x16a   : > { %v407_v12 = vsel %vm400_vm1, %v735_v11, 0.0 }
 0x16b   : > { %408 = vadd.xlane.f32.xlu0 %v407_v12 }
 0x1de   : > { %v409_v14 = vpop.xlane.xlu0 %408 }
 0x1df   : > { %736 = vrcp.f32 %v409_v14 }
 0x1e5   : > { %v737_v15 = vpop.eup %736 }
 0x1e6   : > { %v411_v16 = vmul.f32 %v737_v15, %v735_v11 }
 0x1e8   : > { %661 = vmatmul.msk.f32.vlgmr.msra.gmra.mxu1 %vm400_vm1, %v411_v16  ;;  %435 = vst.msk [vmem:[%s366_s20] sm:$0xff] %vm400_vm1, %v411_v16 }
 0x1e9   : > { %885 = shalt.err (!%p882_p7)
}
 0x1ea   : > { %677 = dma.vmem_to_hbm [thread:$0]  (%p1042_p11), %s470_s10, 128, %s472_s25, %s443_s21  }
 0x1eb   : > { %s453_s26 = scalar_lea.hbm %s1231_s4, %s664_s28  ;;  %s359_s11 = scalar_lea.vmem [#allocation10], %s1150_s8 }
 0x1ec   : > { %s455_s12 = sshll.u32 %s359_s11, 4  ;;  %s457_s15 = sshll.u32 %s453_s26, 4  ;;  %s456_s12 = int_to_ptr.vmem [resolvable:$true] %s455_s12  ;;  %s458_s15 = int_to_ptr.hbm [resolvable:$true] %s457_s15 }
 0x1ed   : > { %s438_s27 = scalar_lea.sflag [#allocation4], %s1147_s6  ;;  %s900_s1 = sshra.s32 %s458_s15, 4  ;;  %s901_s1 = int_to_ptr.hbm [resolvable:$true] %s900_s1 }
 0x1ee   : > { %s902_s20 = scalar_lea.hbm %s901_s1, 8  ;;  %s906_s28 = scalar_lea.hbm %s1231_s4, 16 }
 0x1ef   : > { %p903_p0 = scmp.ne.s32.totalorder %s901_s1, %s902_s20  ;;  %p907_p1 = scmp.lt.s32.totalorder %s901_s1, %s1231_s4 }
 0x1f0   : > { %p908_p6 = scmp.lt.s32.totalorder %s906_s28, %s902_s20 }
 0x1f1   : > { %p904_p8 = pnand %p903_p0, %p1042_p11 }
 0x1f2   : > { %p909_p13 = por %p908_p6, %p907_p1 }
 0x1f3   : > { %p905_p10 = pneg %p904_p8 }
 0x1f5   : > { %p910_p2 = pnand %p909_p13, %p905_p10 }
 0x265   : > { %v432_v17 = vpop.f32.mrf.mxu1 }
 0x266   : > { %436 = vst.msk [vmem:[%s359_s11] sm:$0xff] %vm373_vm0, %v432_v17 }
 0x267   : > { %913 = shalt.err (!%p910_p2)
}
 0x268   : > { %676 = dma.vmem_to_hbm [thread:$0]  (%p1042_p11), %s456_s12, 128, %s458_s15, %s438_s27  }
 0x269 PF: > { %s483_s17 = sand.u32 1, %s952_s18   ;;  %p694_p3 = pnand %p643_p9, %p1046_p12 }
 0x26a   : > { %s484_s22 = scalar_lea.sflag [#allocation4], %s483_s17 }
 0x26b   : > { %p695_p4 = pneg %p694_p3 }
 0x26d   : > { %943 = dma.done.wait (%p695_p4), %s484_s22, 128  }
 0x26e   : > { %945 = vsyncadd (%p695_p4), %s484_s22, 4294967168  ;;  %s494_s16 = scalar_lea.sflag [#allocation12], %s483_s17 }
 0x26f   : > { %947 = dma.done.wait (%p695_p4), %s494_s16, 128  }
 0x270   : > { %949 = vsyncadd (%p695_p4), %s494_s16, 4294967168  ;;  %s1249_s21 = sld [smem:[#allocation20_spill]]  ;;  %s1252_s18 = smov %s956_s19 }
 0x271   : > { %s1250_s7 = sld [smem:[#allocation18_spill]] }
 0x272   : > { %s1251_s20 = sld [smem:[#allocation21_spill]] }
 0x276   : > { %p28_p11 = scmp.ge.s32.totalorder %s1249_s21, 4  }
 0x277   : > { %s1253_s19 = smov %s1250_s7 }
 0x278   :  { %30 = sbr.rel (!%p28_p11) target bundleno = 13 (0xd), region = 135 }
 0x27d   :  { %500 = vsyncpa [#allocation3], 1 }
 0x27e   :  { %502 = vsyncpa [#allocation3 + $0x1], 1 }
 0x27f   :  { %503 = vsyncpa [#allocation6], 1 }
 0x280   :  { %505 = vsyncpa [#allocation6 + $0x1], 1 }
 0x281   :  { %506 = vsyncpa [#allocation9], 1 }
 0x282   :  { %508 = vsyncpa [#allocation9 + $0x1], 1 }
 0x283   :  { %509 = vsyncpa [#allocation4], 1 }
 0x284   :  { %511 = vsyncpa [#allocation4 + $0x1], 1 }
 0x285   :  { %512 = vsyncpa [#allocation12], 1 }
 0x286   :  { %514 = vsyncpa [#allocation12 + $0x1], 1 }

</bundles_post_ra>
